<compile_context>
chip_gen: v7x
topology: tpu7x:2x2x1
jax: 0.10.0
libtpu: 0.0.40
codegen_flags: <defaults>
</compile_context>

<pallas_src>
import math

import jax
import jax.numpy as jnp
from jax.experimental import pallas as pl
from jax.experimental.pallas import tpu as pltpu

_LANE = 128


def _round_up(n, m):
    return ((n + m - 1) // m) * m


def _sigmoid(x):
    # Exact sigmoid via tanh: single EUP op per element, no approx reciprocal.
    return 0.5 * (1.0 + jnp.tanh(0.5 * x))


def _make_kernel(has_bias):
    """Kernel specialized on bias presence (avoids zero-bias DMA + add)."""

    def kernel(*refs):
        if has_bias:
            (h0_ref, c0_ref, x_ref, wh_ref, wx_ref, wc_ref, wol_ref,
             bg_ref, bol_ref, hs_ref, ct_ref, h_scr, c_scr) = refs
        else:
            (h0_ref, c0_ref, x_ref, wh_ref, wx_ref, wc_ref, wol_ref,
             hs_ref, ct_ref, h_scr, c_scr) = refs
            bg_ref = bol_ref = None

        t = pl.program_id(1)
        Hp = hs_ref.shape[-1]

        # Initialize the carried state at the first timestep of this batch block.
        @pl.when(t == 0)
        def _():
            h_scr[...] = h0_ref[...].astype(jnp.float32)
            c_scr[...] = c0_ref[...].astype(jnp.float32)

        h = h_scr[...]                      # (bb, Hp) f32
        c = c_scr[...]                      # (bb, Hp) f32
        x = x_ref[0]                        # (bb, I)

        wdt = wh_ref.dtype
        # Fused, lane-dense (bb, 3*Hp) gate pre-activations; K split over
        # (prev_h, x, c_st) so no per-step activation concat is needed.
        gates = (
            jnp.dot(h.astype(wdt), wh_ref[...], preferred_element_type=jnp.float32)
            + jnp.dot(x.astype(wdt), wx_ref[...], preferred_element_type=jnp.float32)
            + jnp.dot(c.astype(wdt), wc_ref[...], preferred_element_type=jnp.float32))
        if has_bias:
            gates = gates + bg_ref[...]

        # Activate the whole block, then take lane-aligned stripes.
        gates = _sigmoid(gates)
        ft = gates[:, 0:Hp]
        it = gates[:, Hp:2 * Hp]
        ct_t = gates[:, 2 * Hp:3 * Hp]

        # NOTE: faithfully reproduces the PyTorch module: ct gates prev_h (not c_st).
        ct = ft * h + it * ct_t

        o_pre = jnp.dot(ct.astype(wdt), wol_ref[...],
                        preferred_element_type=jnp.float32)
        if has_bias:
            o_pre = o_pre + bol_ref[...]
        ot = _sigmoid(o_pre)
        ht = ot * jnp.tanh(ct)

        # Carry state in VMEM scratch; stream h_t out every step.
        h_scr[...] = ht
        c_scr[...] = ct
        hs_ref[0] = ht.astype(hs_ref.dtype)

        # Emit the final cell state once, at the last timestep.
        @pl.when(t == pl.num_programs(1) - 1)
        def _():
            ct_ref[...] = ct.astype(ct_ref.dtype)

    return kernel


def fuse_peephole_params(W_fg, W_ig, W_og, W_ol,
                         b_fg=None, b_ig=None, b_og=None, b_ol=None,
                         matmul_dtype=None):
    """One-time parameter prep (hoist out of any timestep loop).

    PyTorch layout: W_* are (H, 2H+I); F.linear(a, W) == a @ W.T with the
    concat order [prev_h, x, c_st].  Returns padded, transposed, fused gate
    weights split along K:
        w_h (Hp, 3Hp), w_x (I, 3Hp), w_c (Hp, 3Hp), w_ol (Hp, Hp)
    where Hp = round_up(H, 128) and gate g occupies columns [g*Hp, g*Hp+H).
    Padded rows/columns are zero, so padded lanes never affect real outputs.
    """
    H, cd = W_fg.shape
    I = cd - 2 * H
    Hp = _round_up(H, _LANE)
    wdt = jnp.dtype(matmul_dtype) if matmul_dtype is not None else W_fg.dtype

    w_h = jnp.zeros((Hp, 3 * Hp), wdt)
    w_x = jnp.zeros((I, 3 * Hp), wdt)
    w_c = jnp.zeros((Hp, 3 * Hp), wdt)
    for g, W in enumerate((W_fg, W_ig, W_og)):
        w_h = w_h.at[:H, g * Hp:g * Hp + H].set(W[:, :H].T.astype(wdt))
        w_x = w_x.at[:, g * Hp:g * Hp + H].set(W[:, H:H + I].T.astype(wdt))
        w_c = w_c.at[:H, g * Hp:g * Hp + H].set(W[:, H + I:].T.astype(wdt))
    w_ol = jnp.zeros((Hp, Hp), wdt).at[:H, :H].set(W_ol.T.astype(wdt))

    has_bias = b_fg is not None
    b_gates = b_out = None
    if has_bias:
        b_gates = jnp.zeros((1, 3 * Hp), jnp.float32)
        for g, b in enumerate((b_fg, b_ig, b_og)):
            b_gates = b_gates.at[0, g * Hp:g * Hp + H].set(b.astype(jnp.float32))
        b_out = jnp.zeros((1, Hp), jnp.float32).at[0, :H].set(
            b_ol.astype(jnp.float32))

    return dict(H=H, Hp=Hp, I=I, w_h=w_h, w_x=w_x, w_c=w_c, w_ol=w_ol,
                b_gates=b_gates, b_out=b_out, has_bias=has_bias)


def peepholed_lstm_sequence(x_seq, prev_h, c_st, params, *, batch_block=None):
    """Run the cell over a (T, B, I) sequence inside a single pallas_call.

    Weights stay VMEM-resident across all T steps; h/c live in f32 VMEM
    scratch; x_t / h_t are streamed (double-buffered) per step.
    Returns (hs of shape (T, B, H), final cell state (B, H)).
    """
    T, B, I = x_seq.shape
    H, Hp = params["H"], params["Hp"]
    assert I == params["I"]
    dtype = x_seq.dtype

    if prev_h is None:
        prev_h = jnp.zeros((B, H), dtype)
    if c_st is None:
        c_st = jnp.zeros((B, H), dtype)

    pad = Hp - H
    h0 = jnp.pad(prev_h, ((0, 0), (0, pad))) if pad else prev_h
    c0 = jnp.pad(c_st, ((0, 0), (0, pad))) if pad else c_st

    bb = batch_block if batch_block is not None else B
    assert B % bb == 0 and (bb % 8 == 0 or bb == B)
    nb = B // bb
    has_bias = params["has_bias"]

    const2 = lambda b, t: (0, 0)
    in_specs = [
        pl.BlockSpec((bb, Hp), lambda b, t: (b, 0)),        # prev_h
        pl.BlockSpec((bb, Hp), lambda b, t: (b, 0)),        # c_st
        pl.BlockSpec((1, bb, I), lambda b, t: (t, b, 0)),   # x_t (streamed)
        pl.BlockSpec((Hp, 3 * Hp), const2),                 # w_h (resident)
        pl.BlockSpec((I, 3 * Hp), const2),                  # w_x (resident)
        pl.BlockSpec((Hp, 3 * Hp), const2),                 # w_c (resident)
        pl.BlockSpec((Hp, Hp), const2),                     # w_ol (resident)
    ]
    args = [h0, c0, x_seq,
            params["w_h"], params["w_x"], params["w_c"], params["w_ol"]]
    if has_bias:
        in_specs += [pl.BlockSpec((1, 3 * Hp), const2),
                     pl.BlockSpec((1, Hp), const2)]
        args += [params["b_gates"], params["b_out"]]

    out_specs = (
        pl.BlockSpec((1, bb, Hp), lambda b, t: (t, b, 0)),  # h_t (streamed)
        pl.BlockSpec((bb, Hp), lambda b, t: (b, 0)),        # final c
    )
    out_shape = (jax.ShapeDtypeStruct((T, B, Hp), dtype),
                 jax.ShapeDtypeStruct((B, Hp), dtype))

    # Advisory cost hint for the XLA scheduler.
    wbytes = sum(int(params[k].size) * jnp.dtype(params[k].dtype).itemsize
                 for k in ("w_h", "w_x", "w_c", "w_ol"))
    flops = T * B * (2 * (2 * Hp + I) * 3 * Hp + 2 * Hp * Hp)
    transc = T * B * Hp * 5
    io_bytes = (int(x_seq.size) + int(h0.size) + int(c0.size)
                + T * B * Hp + B * Hp) * jnp.dtype(dtype).itemsize
    cost = pl.CostEstimate(flops=flops, transcendentals=transc,
                           bytes_accessed=wbytes + io_bytes)

    # VMEM budget: resident weights (2 bufs allocated) + double-buffered
    # streamed blocks + f32 scratch, with headroom; capped for v7x (64 MiB).
    itm = jnp.dtype(dtype).itemsize
    blk_bytes = (2 * wbytes
                 + 2 * (2 * bb * Hp + bb * I + bb * Hp) * itm * 2
                 + 2 * bb * Hp * 4)
    vmem_limit = int(min(48 * 2 ** 20, max(16 * 2 ** 20, 2 * blk_bytes)))

    hs, cT = pl.pallas_call(
        _make_kernel(has_bias),
        out_shape=out_shape,
        grid_spec=pltpu.PrefetchScalarGridSpec(
            num_scalar_prefetch=0,
            grid=(nb, T),
            in_specs=in_specs,
            out_specs=out_specs,
            scratch_shapes=[pltpu.VMEM((bb, Hp), jnp.float32),
                            pltpu.VMEM((bb, Hp), jnp.float32)]),
        compiler_params=pltpu.CompilerParams(
            dimension_semantics=("parallel", "arbitrary"),
            vmem_limit_bytes=vmem_limit),
        cost_estimate=cost,
    )(*args)

    return hs[:, :, :H], cT[:, :H]


def peepholed_lstm_cell(x, prev_h, c_st, params, return_cell_state=False):
    """Single-step forward matching PeepholedLSTMCell.forward (T=1 case)."""
    hs, cT = peepholed_lstm_sequence(x[None], prev_h, c_st, params)
    if return_cell_state:
        return hs[0], cT
    return hs[0]


def _ref_step(x, prev_h, c_st, W_fg, W_ig, W_og, W_ol,
              b_fg=None, b_ig=None, b_og=None, b_ol=None):
    """Pure-JAX reference matching the PyTorch forward exactly (f32 matmuls)."""
    hxc = jnp.concatenate([prev_h, x, c_st], axis=1)
    hi = jax.lax.Precision.HIGHEST

    def lin(W, b):
        y = jnp.dot(hxc, W.T, precision=hi)
        return y + b if b is not None else y

    ft = jax.nn.sigmoid(lin(W_fg, b_fg))
    it = jax.nn.sigmoid(lin(W_ig, b_ig))
    ct_t = jax.nn.sigmoid(lin(W_og, b_og))
    ct = ft * prev_h + it * ct_t
    o = jnp.dot(ct, W_ol.T, precision=hi)
    if b_ol is not None:
        o = o + b_ol
    ot = jax.nn.sigmoid(o)
    return ot * jnp.tanh(ct), ct


if __name__ == "__main__":
    input_size, hidden_size, batch, seq = 16, 32, 8, 8
    dtype = jnp.float32

    key = jax.random.PRNGKey(0)
    keys = jax.random.split(key, 11)
    sqrt_k = (1.0 / hidden_size) ** 0.5
    cd = 2 * hidden_size + input_size

    def u(k, shape):
        return jax.random.uniform(k, shape, dtype, minval=-sqrt_k, maxval=sqrt_k)

    W_fg = u(keys[0], (hidden_size, cd))
    W_ig = u(keys[1], (hidden_size, cd))
    W_og = u(keys[2], (hidden_size, cd))
    W_ol = u(keys[3], (hidden_size, hidden_size))

    x_seq = jax.random.normal(keys[4], (seq, batch, input_size), dtype)
    prev_h = jax.random.normal(keys[5], (batch, hidden_size), dtype)
    c_st = jax.random.normal(keys[6], (batch, hidden_size), dtype)

    # --- single-step forward (bias=False, module default) ---
    params = fuse_peephole_params(W_fg, W_ig, W_og, W_ol)
    ht = jax.block_until_ready(peepholed_lstm_cell(x_seq[0], prev_h, c_st, params))
    ht_ref, _ = _ref_step(x_seq[0], prev_h, c_st, W_fg, W_ig, W_og, W_ol)
    assert ht.shape == (batch, hidden_size)
    assert jnp.allclose(ht, ht_ref, atol=5e-4, rtol=5e-4), \
        float(jnp.max(jnp.abs(ht - ht_ref)))

    # --- full recurrence inside one kernel (weights VMEM-resident over T) ---
    hs, cT = jax.block_until_ready(
        peepholed_lstm_sequence(x_seq, prev_h, c_st, params))
    h_r, c_r = prev_h, c_st
    hs_ref = []
    for t in range(seq):
        h_r, c_r = _ref_step(x_seq[t], h_r, c_r, W_fg, W_ig, W_og, W_ol)
        hs_ref.append(h_r)
    hs_ref = jnp.stack(hs_ref)
    assert jnp.allclose(hs, hs_ref, atol=5e-4, rtol=5e-4), \
        float(jnp.max(jnp.abs(hs - hs_ref)))
    assert jnp.allclose(cT, c_r, atol=5e-4, rtol=5e-4)

    # --- bias=True path (specialized kernel variant) ---
    b_fg, b_ig = u(keys[7], (hidden_size,)), u(keys[8], (hidden_size,))
    b_og, b_ol = u(keys[9], (hidden_size,)), u(keys[10], (hidden_size,))
    params_b = fuse_peephole_params(W_fg, W_ig, W_og, W_ol,
                                    b_fg, b_ig, b_og, b_ol)
    ht_b = jax.block_until_ready(
        peepholed_lstm_cell(x_seq[0], prev_h, c_st, params_b))
    ht_b_ref, _ = _ref_step(x_seq[0], prev_h, c_st, W_fg, W_ig, W_og, W_ol,
                            b_fg, b_ig, b_og, b_ol)
    assert jnp.allclose(ht_b, ht_b_ref, atol=5e-4, rtol=5e-4)

    print("KERNEL_OK")
</pallas_src>

<mosaic_0001>
module attributes {stable_mosaic.version = 11 : i64} {
  func.func @kernel(%arg0: i32, %arg1: i32, %arg2: memref<8x128xf32, #tpu.memory_space<vmem>>, %arg3: memref<8x128xf32, #tpu.memory_space<vmem>>, %arg4: memref<1x8x16xf32, #tpu.memory_space<vmem>>, %arg5: memref<128x384xf32, #tpu.memory_space<vmem>>, %arg6: memref<16x384xf32, #tpu.memory_space<vmem>>, %arg7: memref<128x384xf32, #tpu.memory_space<vmem>>, %arg8: memref<128x128xf32, #tpu.memory_space<vmem>>, %arg9: memref<1x8x128xf32, #tpu.memory_space<vmem>>, %arg10: memref<8x128xf32, #tpu.memory_space<vmem>>, %arg11: memref<8x128xf32, #tpu.memory_space<vmem>>, %arg12: memref<8x128xf32, #tpu.memory_space<vmem>>) attributes {dimension_semantics = [#tpu.dimension_semantics<parallel>, #tpu.dimension_semantics<arbitrary>], iteration_bounds = array<i64: 1, 1>, scalar_prefetch = 0 : i64, scratch_operands = 2 : i64, tpu.core_type = #tpu.core_type<tc>, window_params = [{transform_indices = @transform_0, window_bounds = array<i64: 8, 128>}, {transform_indices = @transform_1, window_bounds = array<i64: 8, 128>}, {transform_indices = @transform_2, window_bounds = array<i64: 1, 8, 16>}, {pipeline_mode = #tpu.pipeline_mode<synchronous>, transform_indices = @transform_3, window_bounds = array<i64: 128, 384>}, {pipeline_mode = #tpu.pipeline_mode<synchronous>, transform_indices = @transform_4, window_bounds = array<i64: 16, 384>}, {pipeline_mode = #tpu.pipeline_mode<synchronous>, transform_indices = @transform_5, window_bounds = array<i64: 128, 384>}, {pipeline_mode = #tpu.pipeline_mode<synchronous>, transform_indices = @transform_6, window_bounds = array<i64: 128, 128>}, {transform_indices = @transform_7, window_bounds = array<i64: 1, 8, 128>}, {transform_indices = @transform_8, window_bounds = array<i64: 8, 128>}]} {
    %c0_i32 = arith.constant 0 : i32
    %0 = arith.cmpi eq, %arg1, %c0_i32 : i32
    %1 = arith.extui %0 : i1 to i32
    %c0_i32_0 = arith.constant 0 : i32
    %2 = arith.cmpi ne, %1, %c0_i32_0 : i32
    scf.if %2 {
      %c0_33 = arith.constant 0 : index
      %c0_34 = arith.constant 0 : index
      %47 = vector.load %arg2[%c0_33, %c0_34] : memref<8x128xf32, #tpu.memory_space<vmem>>, vector<8x128xf32>
      %c0_35 = arith.constant 0 : index
      %c0_36 = arith.constant 0 : index
      %48 = vector.load %arg11[%c0_35, %c0_36] : memref<8x128xf32, #tpu.memory_space<vmem>>, vector<8x128xf32>
      tpu.vector_store %arg11[%c0_35, %c0_36], %47 {strides = array<i32>} : memref<8x128xf32, #tpu.memory_space<vmem>>, vector<8x128xf32>,
      %c0_37 = arith.constant 0 : index
      %c0_38 = arith.constant 0 : index
      %49 = vector.load %arg3[%c0_37, %c0_38] : memref<8x128xf32, #tpu.memory_space<vmem>>, vector<8x128xf32>
      %c0_39 = arith.constant 0 : index
      %c0_40 = arith.constant 0 : index
      %50 = vector.load %arg12[%c0_39, %c0_40] : memref<8x128xf32, #tpu.memory_space<vmem>>, vector<8x128xf32>
      tpu.vector_store %arg12[%c0_39, %c0_40], %49 {strides = array<i32>} : memref<8x128xf32, #tpu.memory_space<vmem>>, vector<8x128xf32>,
    } else {
    }
    %c0 = arith.constant 0 : index
    %c0_1 = arith.constant 0 : index
    %3 = vector.load %arg11[%c0, %c0_1] : memref<8x128xf32, #tpu.memory_space<vmem>>, vector<8x128xf32>
    %c0_2 = arith.constant 0 : index
    %c0_3 = arith.constant 0 : index
    %4 = vector.load %arg12[%c0_2, %c0_3] : memref<8x128xf32, #tpu.memory_space<vmem>>, vector<8x128xf32>
    %c0_4 = arith.constant 0 : index
    %c0_5 = arith.constant 0 : index
    %c0_6 = arith.constant 0 : index
    %5 = vector.load %arg4[%c0_4, %c0_5, %c0_6] : memref<1x8x16xf32, #tpu.memory_space<vmem>>, vector<1x8x16xf32>
    %6 = vector.shape_cast %5 : vector<1x8x16xf32> to vector<8x16xf32>
    %c0_7 = arith.constant 0 : index
    %c0_8 = arith.constant 0 : index
    %7 = vector.load %arg5[%c0_7, %c0_8] : memref<128x384xf32, #tpu.memory_space<vmem>>, vector<128x384xf32>
    %cst = arith.constant dense<0.000000e+00> : vector<8x384xf32>
    %8 = tpu.matmul %3, %7, %cst {dimension_numbers = #tpu.dot_dimension_numbers<[1], [0], [0], [1], [0, 0, 1, 1], [], []>} : vector<8x128xf32>, vector<128x384xf32>, vector<8x384xf32> -> vector<8x384xf32>
    %c0_9 = arith.constant 0 : index
    %c0_10 = arith.constant 0 : index
    %9 = vector.load %arg6[%c0_9, %c0_10] : memref<16x384xf32, #tpu.memory_space<vmem>>, vector<16x384xf32>
    %cst_11 = arith.constant dense<0.000000e+00> : vector<8x384xf32>
    %10 = tpu.matmul %6, %9, %cst_11 {dimension_numbers = #tpu.dot_dimension_numbers<[1], [0], [0], [1], [0, 0, 1, 1], [], []>} : vector<8x16xf32>, vector<16x384xf32>, vector<8x384xf32> -> vector<8x384xf32>
    %11 = arith.addf %8, %10 : vector<8x384xf32>
    %c0_12 = arith.constant 0 : index
    %c0_13 = arith.constant 0 : index
    %12 = vector.load %arg7[%c0_12, %c0_13] : memref<128x384xf32, #tpu.memory_space<vmem>>, vector<128x384xf32>
    %cst_14 = arith.constant dense<0.000000e+00> : vector<8x384xf32>
    %13 = tpu.matmul %4, %12, %cst_14 {dimension_numbers = #tpu.dot_dimension_numbers<[1], [0], [0], [1], [0, 0, 1, 1], [], []>} : vector<8x128xf32>, vector<128x384xf32>, vector<8x384xf32> -> vector<8x384xf32>
    %14 = arith.addf %11, %13 : vector<8x384xf32>
    %cst_15 = arith.constant 5.000000e-01 : f32
    %15 = vector.broadcast %cst_15 : f32 to vector<8x384xf32>
    %16 = arith.mulf %15, %14 : vector<8x384xf32>
    %17 = math.tanh %16 : vector<8x384xf32>
    %cst_16 = arith.constant 1.000000e+00 : f32
    %18 = vector.broadcast %cst_16 : f32 to vector<8x384xf32>
    %19 = arith.addf %18, %17 : vector<8x384xf32>
    %cst_17 = arith.constant 5.000000e-01 : f32
    %20 = vector.broadcast %cst_17 : f32 to vector<8x384xf32>
    %21 = arith.mulf %20, %19 : vector<8x384xf32>
    %22 = vector.extract_strided_slice %21 {offsets = [0, 0], sizes = [8, 128], strides = [1, 1]} : vector<8x384xf32> to vector<8x128xf32>
    %23 = vector.extract_strided_slice %21 {offsets = [0, 128], sizes = [8, 128], strides = [1, 1]} : vector<8x384xf32> to vector<8x128xf32>
    %24 = vector.extract_strided_slice %21 {offsets = [0, 256], sizes = [8, 128], strides = [1, 1]} : vector<8x384xf32> to vector<8x128xf32>
    %25 = arith.mulf %22, %3 : vector<8x128xf32>
    %26 = arith.mulf %23, %24 : vector<8x128xf32>
    %27 = arith.addf %25, %26 : vector<8x128xf32>
    %c0_18 = arith.constant 0 : index
    %c0_19 = arith.constant 0 : index
    %28 = vector.load %arg8[%c0_18, %c0_19] : memref<128x128xf32, #tpu.memory_space<vmem>>, vector<128x128xf32>
    %cst_20 = arith.constant dense<0.000000e+00> : vector<8x128xf32>
    %29 = tpu.matmul %27, %28, %cst_20 {dimension_numbers = #tpu.dot_dimension_numbers<[1], [0], [0], [1], [0, 0, 1, 1], [], []>} : vector<8x128xf32>, vector<128x128xf32>, vector<8x128xf32> -> vector<8x128xf32>
    %cst_21 = arith.constant 5.000000e-01 : f32
    %30 = vector.broadcast %cst_21 : f32 to vector<8x128xf32>
    %31 = arith.mulf %30, %29 : vector<8x128xf32>
    %32 = math.tanh %31 : vector<8x128xf32>
    %cst_22 = arith.constant 1.000000e+00 : f32
    %33 = vector.broadcast %cst_22 : f32 to vector<8x128xf32>
    %34 = arith.addf %33, %32 : vector<8x128xf32>
    %cst_23 = arith.constant 5.000000e-01 : f32
    %35 = vector.broadcast %cst_23 : f32 to vector<8x128xf32>
    %36 = arith.mulf %35, %34 : vector<8x128xf32>
    %37 = math.tanh %27 : vector<8x128xf32>
    %38 = arith.mulf %36, %37 : vector<8x128xf32>
    %c0_24 = arith.constant 0 : index
    %c0_25 = arith.constant 0 : index
    %39 = vector.load %arg11[%c0_24, %c0_25] : memref<8x128xf32, #tpu.memory_space<vmem>>, vector<8x128xf32>
    tpu.vector_store %arg11[%c0_24, %c0_25], %38 {strides = array<i32>} : memref<8x128xf32, #tpu.memory_space<vmem>>, vector<8x128xf32>,
    %c0_26 = arith.constant 0 : index
    %c0_27 = arith.constant 0 : index
    %40 = vector.load %arg12[%c0_26, %c0_27] : memref<8x128xf32, #tpu.memory_space<vmem>>, vector<8x128xf32>
    tpu.vector_store %arg12[%c0_26, %c0_27], %27 {strides = array<i32>} : memref<8x128xf32, #tpu.memory_space<vmem>>, vector<8x128xf32>,
    %c0_28 = arith.constant 0 : index
    %c0_29 = arith.constant 0 : index
    %c0_30 = arith.constant 0 : index
    %41 = vector.load %arg9[%c0_28, %c0_29, %c0_30] : memref<1x8x128xf32, #tpu.memory_space<vmem>>, vector<1x8x128xf32>
    %42 = vector.shape_cast %41 : vector<1x8x128xf32> to vector<8x128xf32>
    %43 = vector.shape_cast %38 : vector<8x128xf32> to vector<1x8x128xf32>
    tpu.vector_store %arg9[%c0_28, %c0_29, %c0_30], %43 {strides = array<i32>} : memref<1x8x128xf32, #tpu.memory_space<vmem>>, vector<1x8x128xf32>,
    %c0_i32_31 = arith.constant 0 : i32
    %44 = arith.cmpi eq, %arg1, %c0_i32_31 : i32
    %45 = arith.extui %44 : i1 to i32
    %c0_i32_32 = arith.constant 0 : i32
    %46 = arith.cmpi ne, %45, %c0_i32_32 : i32
    scf.if %46 {
      %c0_33 = arith.constant 0 : index
      %c0_34 = arith.constant 0 : index
      %47 = vector.load %arg10[%c0_33, %c0_34] : memref<8x128xf32, #tpu.memory_space<vmem>>, vector<8x128xf32>
      tpu.vector_store %arg10[%c0_33, %c0_34], %27 {strides = array<i32>} : memref<8x128xf32, #tpu.memory_space<vmem>>, vector<8x128xf32>,
    } else {
    }
    return
  }
  func.func @transform_0(%arg0: i32, %arg1: i32) -> (i32, i32) {
    %c0_i32 = arith.constant 0 : i32
    %c0_i32_0 = arith.constant 0 : i32
    return %arg0, %c0_i32 : i32, i32
  }
  func.func @transform_1(%arg0: i32, %arg1: i32) -> (i32, i32) {
    %c0_i32 = arith.constant 0 : i32
    %c0_i32_0 = arith.constant 0 : i32
    return %arg0, %c0_i32 : i32, i32
  }
  func.func @transform_2(%arg0: i32, %arg1: i32) -> (i32, i32, i32) {
    %c0_i32 = arith.constant 0 : i32
    %c0_i32_0 = arith.constant 0 : i32
    return %arg1, %arg0, %c0_i32 : i32, i32, i32
  }
  func.func @transform_3(%arg0: i32, %arg1: i32) -> (i32, i32) {
    %c0_i32 = arith.constant 0 : i32
    %c0_i32_0 = arith.constant 0 : i32
    %c0_i32_1 = arith.constant 0 : i32
    return %c0_i32, %c0_i32_0 : i32, i32
  }
  func.func @transform_4(%arg0: i32, %arg1: i32) -> (i32, i32) {
    %c0_i32 = arith.constant 0 : i32
    %c0_i32_0 = arith.constant 0 : i32
    %c0_i32_1 = arith.constant 0 : i32
    return %c0_i32, %c0_i32_0 : i32, i32
  }
  func.func @transform_5(%arg0: i32, %arg1: i32) -> (i32, i32) {
    %c0_i32 = arith.constant 0 : i32
    %c0_i32_0 = arith.constant 0 : i32
    %c0_i32_1 = arith.constant 0 : i32
    return %c0_i32, %c0_i32_0 : i32, i32
  }
  func.func @transform_6(%arg0: i32, %arg1: i32) -> (i32, i32) {
    %c0_i32 = arith.constant 0 : i32
    %c0_i32_0 = arith.constant 0 : i32
    %c0_i32_1 = arith.constant 0 : i32
    return %c0_i32, %c0_i32_0 : i32, i32
  }
  func.func @transform_7(%arg0: i32, %arg1: i32) -> (i32, i32, i32) {
    %c0_i32 = arith.constant 0 : i32
    %c0_i32_0 = arith.constant 0 : i32
    return %arg1, %arg0, %c0_i32 : i32, i32, i32
  }
  func.func @transform_8(%arg0: i32, %arg1: i32) -> (i32, i32) {
    %c0_i32 = arith.constant 0 : i32
    %c0_i32_0 = arith.constant 0 : i32
    return %arg0, %c0_i32 : i32, i32
  }
}

</mosaic_0001>

<bundles_post_ra>
// kernel: tpu_custom_call.1
= control target key start
LH: loop header
LB: loop body
LE: loop exit
PB: predicated region body
PF: predicated region fallthrough
CT: control target
= control target key end

     0   :  { %14 = vsyncpa [#allocation5], 0  ;;  %s1598_s0 = inlined_call_operand.hbm [shape: f32[8,128], index: 0, kind: input, shape index: {}]   ;;  %s1599_s1 = inlined_call_operand.hbm [shape: f32[8,128], index: 1, kind: input, shape index: {}]   ;;  %s1600_s2 = inlined_call_operand.hbm [shape: f32[1,8,16], index: 2, kind: input, shape index: {}]   ;;  %s1601_s3 = inlined_call_operand.hbm [shape: f32[128,384], index: 3, kind: input, shape index: {}]   ;;  %s1602_s4 = inlined_call_operand.hbm [shape: f32[16,384], index: 4, kind: input, shape index: {}]   ;;  %s1603_s5 = inlined_call_operand.hbm [shape: f32[128,384], index: 5, kind: input, shape index: {}]   ;;  %s1604_s6 = inlined_call_operand.hbm [shape: f32[128,128], index: 6, kind: input, shape index: {}]   ;;  %s1605_s7 = inlined_call_operand.hbm [shape: f32[1,8,128], index: 7, kind: output, shape index: {0}]   ;;  %s1606_s8 = inlined_call_operand.hbm [shape: f32[8,128], index: 8, kind: output, shape index: {1}]  }
   0x1   :  { %15 = vsyncpa [#allocation8], 0 }
   0x2   :  { %16 = vsyncpa [#allocation11], 0 }
   0x3   :  { %17 = vsyncpa [#allocation14], 0 }
   0x4   :  { %18 = vsyncpa [#allocation6], 0 }
   0x5   :  { %19 = vsyncpa [#allocation18], 0  ;;  %s1363_s27 = smov [#allocation7]   ;;  %s1364_s29 = smov [#allocation10]  }
   0x6   :  { %s36_s28 = sshll.u32 %s1363_s27, 4  ;;  %s55_s30 = sshll.u32 %s1364_s29, 4  ;;  %s37_s28 = int_to_ptr.vmem [resolvable:$true] %s36_s28  ;;  %s1424_s30 = int_to_ptr.vmem [resolvable:$true] %s55_s30 }
   0x7   :  { %s1153_s11 = scalar_lea.hbm %s1599_s1, 128 }
   0x8   :  { %p1154_p0 = scmp.ne.s32.totalorder %s1599_s1, %s1153_s11  ;;  %p1157_p1 = scmp.lt.u32.totalorder %s1153_s11, %s1599_s1 }
   0xa   :  { %p1159_p2 = pnand %p1157_p1, %p1154_p0 }
   0xc   :  { %1162 = shalt.err (!%p1159_p2)
}
   0xd   :  { %s1163_s16 = scalar_lea.vmem %s37_s28, 128  ;;  %p1168_p4 = scmp.lt.s32.totalorder %s37_s28, %s37_s28 }
   0xe   :  { %p1164_p3 = scmp.ne.s32.totalorder %s37_s28, %s1163_s16  ;;  %p1169_p5 = scmp.lt.s32.totalorder %s1163_s16, %s1163_s16 }
  0x10   :  { %p1170_p6 = por %p1169_p5, %p1168_p4 }
  0x12   :  { %p1171_p7 = pnand %p1170_p6, %p1164_p3 }
  0x14   :  { %1174 = shalt.err (!%p1171_p7)
}
  0x15   :  { %39 = dma.hbm_to_vmem [thread:$0]  %s1599_s1, 128, %s37_s28, [#allocation8]  }
  0x16   :  { %s1175_s21 = scalar_lea.hbm %s1601_s3, 6144 }
  0x17   :  { %p1176_p8 = scmp.ne.s32.totalorder %s1601_s3, %s1175_s21  ;;  %p1179_p9 = scmp.lt.u32.totalorder %s1175_s21, %s1601_s3 }
  0x19   :  { %p1181_p10 = pnand %p1179_p9, %p1176_p8 }
  0x1b   :  { %1184 = shalt.err (!%p1181_p10)
}
  0x1c   :  { %s1185_s26 = scalar_lea.vmem %s1424_s30, 6144  ;;  %p1190_p12 = scmp.lt.s32.totalorder %s1424_s30, %s1424_s30 }
  0x1d   :  { %p1186_p11 = scmp.ne.s32.totalorder %s1424_s30, %s1185_s26  ;;  %p1191_p13 = scmp.lt.s32.totalorder %s1185_s26, %s1185_s26 }
  0x1f   :  { %p1192_p0 = por %p1191_p13, %p1190_p12 }
  0x21   :  { %p1193_p1 = pnand %p1192_p0, %p1186_p11 }
  0x23   :  { %1196 = shalt.err (!%p1193_p1)
}
  0x24   :  { %s1365_s1 = smov 384   ;;  %s1366_s27 = smov 24  }
  0x25   :  { %61 = dma.hbm_to_vmem [thread:$0]  %s1601_s3, 6144, %s1424_s30, [#allocation11], %s1365_s1, %s1365_s1, %s1366_s27  }
  0x26   :  { %s1367_s9 = smov [#allocation13]   ;;  %s1368_s11 = smov [#allocation4]  }
  0x27   :  { %s79_s10 = sshll.u32 %s1367_s9, 4  ;;  %s26_s12 = sshll.u32 %s1368_s11, 4  ;;  %s80_s10 = int_to_ptr.vmem [resolvable:$true] %s79_s10  ;;  %s27_s12 = int_to_ptr.vmem [resolvable:$true] %s26_s12 }
  0x28   :  { %s1197_s15 = scalar_lea.hbm %s1603_s5, 6144 }
  0x29   :  { %p1198_p2 = scmp.ne.s32.totalorder %s1603_s5, %s1197_s15  ;;  %p1201_p3 = scmp.lt.u32.totalorder %s1197_s15, %s1603_s5 }
  0x2b   :  { %p1203_p4 = pnand %p1201_p3, %p1198_p2 }
  0x2d   :  { %1206 = shalt.err (!%p1203_p4)
}
  0x2e   :  { %s1207_s3 = scalar_lea.vmem %s80_s10, 6144  ;;  %p1212_p6 = scmp.lt.s32.totalorder %s80_s10, %s80_s10 }
  0x2f   :  { %p1208_p5 = scmp.ne.s32.totalorder %s80_s10, %s1207_s3  ;;  %p1213_p7 = scmp.lt.s32.totalorder %s1207_s3, %s1207_s3 }
  0x31   :  { %p1214_p8 = por %p1213_p7, %p1212_p6 }
  0x33   :  { %p1215_p9 = pnand %p1214_p8, %p1208_p5 }
  0x35   :  { %1218 = shalt.err (!%p1215_p9)
}
  0x36   :  { %85 = dma.hbm_to_vmem [thread:$0]  %s1603_s5, 6144, %s80_s10, [#allocation14], %s1365_s1, %s1365_s1, %s1366_s27  }
  0x37   :  { %s1219_s23 = scalar_lea.hbm %s1598_s0, 128 }
  0x38   :  { %p1220_p10 = scmp.ne.s32.totalorder %s1598_s0, %s1219_s23  ;;  %p1223_p11 = scmp.lt.u32.totalorder %s1219_s23, %s1598_s0 }
  0x3a   :  { %p1225_p12 = pnand %p1223_p11, %p1220_p10 }
  0x3c   :  { %1228 = shalt.err (!%p1225_p12)
}
  0x3d   :  { %s1229_s29 = scalar_lea.vmem %s27_s12, 128  ;;  %p1234_p0 = scmp.lt.s32.totalorder %s27_s12, %s27_s12 }
  0x3e   :  { %p1230_p13 = scmp.ne.s32.totalorder %s27_s12, %s1229_s29  ;;  %p1235_p1 = scmp.lt.s32.totalorder %s1229_s29, %s1229_s29 }
  0x40   :  { %p1236_p2 = por %p1235_p1, %p1234_p0 }
  0x42   :  { %p1237_p3 = pnand %p1236_p2, %p1230_p13 }
  0x44   :  { %1240 = shalt.err (!%p1237_p3)
}
  0x45   :  { %29 = dma.hbm_to_vmem [thread:$0]  %s1598_s0, 128, %s27_s12, [#allocation5]  }
  0x46   :  { %s1369_s10 = smov [#allocation9]   ;;  %s1370_s13 = smov [#allocation12]  }
  0x47   :  { %s46_s11 = sshll.u32 %s1369_s10, 4  ;;  %s67_s14 = sshll.u32 %s1370_s13, 4  ;;  %s47_s11 = int_to_ptr.vmem [resolvable:$true] %s46_s11  ;;  %s1485_s14 = int_to_ptr.vmem [resolvable:$true] %s67_s14 }
  0x48   :  { %s1241_s17 = scalar_lea.hbm %s1600_s2, 128 }
  0x49   :  { %p1242_p4 = scmp.ne.s32.totalorder %s1600_s2, %s1241_s17  ;;  %p1245_p5 = scmp.lt.u32.totalorder %s1241_s17, %s1600_s2 }
  0x4b   :  { %p1247_p6 = pnand %p1245_p5, %p1242_p4 }
  0x4d   :  { %1250 = shalt.err (!%p1247_p6)
}
  0x4e   :  { %s1251_s0 = scalar_lea.vmem %s47_s11, 128  ;;  %p1256_p8 = scmp.lt.s32.totalorder %s47_s11, %s47_s11 }
  0x4f   :  { %p1252_p7 = scmp.ne.s32.totalorder %s47_s11, %s1251_s0  ;;  %p1257_p9 = scmp.lt.s32.totalorder %s1251_s0, %s1251_s0 }
  0x51   :  { %p1258_p10 = por %p1257_p9, %p1256_p8 }
  0x53   :  { %p1259_p11 = pnand %p1258_p10, %p1252_p7 }
  0x55   :  { %1262 = shalt.err (!%p1259_p11)
}
  0x56   :  { %49 = dma.hbm_to_vmem [thread:$0]  %s1600_s2, 128, %s47_s11, [#allocation8]  }
  0x57   :  { %s1263_s23 = scalar_lea.hbm %s1602_s4, 768 }
  0x58   :  { %p1264_p12 = scmp.ne.s32.totalorder %s1602_s4, %s1263_s23  ;;  %p1267_p13 = scmp.lt.u32.totalorder %s1263_s23, %s1602_s4 }
  0x5a   :  { %p1269_p0 = pnand %p1267_p13, %p1264_p12 }
  0x5c   :  { %1272 = shalt.err (!%p1269_p0)
}
  0x5d   :  { %s1273_s29 = scalar_lea.vmem %s1485_s14, 768  ;;  %p1278_p2 = scmp.lt.s32.totalorder %s1485_s14, %s1485_s14 }
  0x5e   :  { %p1274_p1 = scmp.ne.s32.totalorder %s1485_s14, %s1273_s29  ;;  %p1279_p3 = scmp.lt.s32.totalorder %s1273_s29, %s1273_s29 }
  0x60   :  { %p1280_p4 = por %p1279_p3, %p1278_p2 }
  0x62   :  { %p1281_p5 = pnand %p1280_p4, %p1274_p1 }
  0x64   :  { %1284 = shalt.err (!%p1281_p5)
}
  0x65   :  { %73 = dma.hbm_to_vmem [thread:$0]  %s1602_s4, 768, %s1485_s14, [#allocation11], %s1365_s1, %s1365_s1, %s1366_s27  }
  0x66   :  { %s1371_s9 = smov [#allocation15]   ;;  %s1285_s15 = scalar_lea.hbm %s1604_s6, 2048 }
  0x67   :  { %s91_s10 = sshll.u32 %s1371_s9, 4  ;;  %p1286_p6 = scmp.ne.s32.totalorder %s1604_s6, %s1285_s15  ;;  %s92_s10 = int_to_ptr.vmem [resolvable:$true] %s91_s10 }
  0x68   :  { %p1289_p7 = scmp.lt.u32.totalorder %s1285_s15, %s1604_s6 }
  0x6a   :  { %p1291_p8 = pnand %p1289_p7, %p1286_p6 }
  0x6c   :  { %1294 = shalt.err (!%p1291_p8)
}
  0x6d   :  { %s1295_s3 = scalar_lea.vmem %s92_s10, 2048  ;;  %p1300_p10 = scmp.lt.s32.totalorder %s92_s10, %s92_s10 }
  0x6e   :  { %p1296_p9 = scmp.ne.s32.totalorder %s92_s10, %s1295_s3  ;;  %p1301_p11 = scmp.lt.s32.totalorder %s1295_s3, %s1295_s3 }
  0x70   :  { %p1302_p12 = por %p1301_p11, %p1300_p10 }
  0x72   :  { %p1303_p13 = pnand %p1302_p12, %p1296_p9 }
  0x74   :  { %1306 = shalt.err (!%p1303_p13)
}
  0x75   :  { %s1372_s4 = smov 128   ;;  %s1373_s1 = smov 8  }
  0x76   :  { %97 = dma.hbm_to_vmem [thread:$0]  %s1604_s6, 2048, %s92_s10, [#allocation14], %s1372_s4, %s1372_s4, %s1373_s1  }
  0x77   :  { %1351 = dma.done.wait [#allocation5], 128  }
  0x78   :  { %1352 = vsyncadd [#allocation5], 4294967168 }
  0x79   :  { %1353 = dma.done.wait [#allocation8], 256  }
  0x7a   :  { %1354 = vsyncadd [#allocation8], 4294967040 }
  0x7b   :  { %1355 = dma.done.wait [#allocation11], 6912  }
  0x7c   :  { %1356 = vsyncadd [#allocation11], 4294960384 }
  0x7d   :  { %1357 = dma.done.wait [#allocation14], 8192  }
  0x7e   :  { %1358 = vsyncadd [#allocation14], 4294959104  ;;  %v1374_v0 = vmov 0.0   ;;  %v179_v1 = vld [vmem:[#allocation12 + $0x8] sm:$0xff]  ;;  %v182_v2 = vld [vmem:[#allocation12 + $0x20] sm:$0xff]  ;;  %vm184_vm0 = vcmask 130048  }
  0x7f   :  { %252 = vmatprep.mubr.f32.mxu1 %v1374_v0  ;;  %393 = vmatprep.mubr.f32.mxu0 %v1374_v0  ;;  %v131_v3 = vld [vmem:[#allocation10 + $0x8] sm:$0xff]  ;;  %v976_v4 = vpack.c.bf16 %v182_v2, %v179_v1  ;;  %v134_v5 = vld [vmem:[#allocation10 + $0x20] sm:$0xff]  ;;  %v181_v7 = vld [vmem:[#allocation12 + $0x18] sm:$0xff]  ;;  %v1375_v21 = vmov 0.0|0.0   ;;  %vm1376_vm1 = vmmov 0   ;;  %s1377_s6 = smov [#allocation17]  }
  0x80   :  { %v178_v6 = vld [vmem:[#allocation12] sm:$0xff]  ;;  %v983_v8 = vpack.c.bf16 %v134_v5, %v131_v3  ;;  %v133_v11 = vld [vmem:[#allocation10 + $0x18] sm:$0xff]  ;;  %v140_v15 = vld [vmem:[#allocation10 + $0x50] sm:$0xff]  ;;  %s792_s30 = sshll.u32 %s1377_s6, 4  ;;  %s793_s30 = int_to_ptr.vmem [resolvable:$true] %s792_s30 }
  0x81   :  { %v978_v9 = vpack.c.bf16 %v181_v7, %v178_v6  ;;  %v130_v10 = vld [vmem:[#allocation10] sm:$0xff]  ;;  %v129_v12 = vld [vmem:[#allocation9] sm:$0xff]  ;;  %977 = vmatprep.subr.bf16.mxu1 %v976_v4  ;;  %v180_v16 = vld [vmem:[#allocation12 + $0x10] sm:$0xff]  ;;  %s1307_s0 = scalar_lea.vmem %s793_s30, 128  ;;  %p1312_p1 = scmp.lt.s32.totalorder %s793_s30, %s793_s30 }
  0x82   :  { %v985_v13 = vpack.c.bf16 %v133_v11, %v130_v10  ;;  %v137_v14 = vld [vmem:[#allocation10 + $0x38] sm:$0xff]  ;;  %984 = vmatprep.subr.bf16.mxu0 %v983_v8  ;;  %v183_v18 = vld [vmem:[#allocation12 + $0x28] sm:$0xff]  ;;  %v136_v19 = vld [vmem:[#allocation10 + $0x30] sm:$0xff]  ;;  %p1308_p0 = scmp.ne.s32.totalorder %s793_s30, %s1307_s0  ;;  %p1313_p2 = scmp.lt.s32.totalorder %s1307_s0, %s1307_s0 }
  0x83   :  { %979 = vmatpush1.bf16.msra.mxu1 %v978_v9  ;;  %v987_v17 = vpack.c.bf16 %v140_v15, %v137_v14  ;;  %v139_v20 = vld [vmem:[#allocation10 + $0x48] sm:$0xff]  ;;  %v981_v22 = vpack.c.bf16 %v183_v18, %v180_v16  ;;  %v146_v25 = vld [vmem:[#allocation10 + $0x80] sm:$0xff]  ;;  %v145_v28 = vld [vmem:[#allocation10 + $0x78] sm:$0xff] }
  0x84   :  { %986 = vmatpush1.bf16.msra.mxu0 %v985_v13  ;;  %980 = vmatprep.subr.bf16.mxu1 %v1375_v21  ;;  %v989_v23 = vpack.c.bf16 %v139_v20, %v136_v19  ;;  %v143_v24 = vld [vmem:[#allocation10 + $0x68] sm:$0xff]  ;;  %v142_v26 = vld [vmem:[#allocation10 + $0x60] sm:$0xff]  ;;  %v132_v29 = vld [vmem:[#allocation10 + $0x10] sm:$0xff]  ;;  %p1314_p3 = por %p1313_p2, %p1312_p1 }
  0x85   :  { %988 = vmatprep.subr.bf16.mxu0 %v987_v17  ;;  %v991_v27 = vpack.c.bf16 %v146_v25, %v143_v24  ;;  %v135_v30 = vld [vmem:[#allocation10 + $0x28] sm:$0xff]  ;;  %v149_v31 = vld [vmem:[#allocation10 + $0x98] sm:$0xff]  ;;  %v152_v32 = vld [vmem:[#allocation10 + $0xb0] sm:$0xff]  ;;  %v993_v34 = vpack.c.bf16 %v145_v28, %v142_v26 }
  0x86   :  { %808 = vmatmul.mubr.msk.f32.vlgmr.msra.gmra.mrb[0].mxu1 %vm184_vm0, %v129_v12  ;;  %v1016_v33 = vpack.c.bf16 %v135_v30, %v132_v29  ;;  %v138_v35 = vld [vmem:[#allocation10 + $0x40] sm:$0xff]  ;;  %v141_v36 = vld [vmem:[#allocation10 + $0x58] sm:$0xff]  ;;  %v995_v37 = vpack.c.bf16 %v152_v32, %v149_v31  ;;  %v148_v38 = vld [vmem:[#allocation10 + $0x90] sm:$0xff]  ;;  %p1315_p4 = pnand %p1314_p3, %p1308_p0 }
  0x87   :  { %982 = vmatpush3.bf16.msra.mxu1 %v981_v22  ;;  %868 = vmatprep.mubr.msk.f32.mxu1 %vm1376_vm1, %v1374_v0  ;;  %v151_v39 = vld [vmem:[#allocation10 + $0xa8] sm:$0xff]  ;;  %v158_v41 = vld [vmem:[#allocation10 + $0xe0] sm:$0xff]  ;;  %v1019_v42 = vpack.c.bf16 %v141_v36, %v138_v35  ;;  %v144_v44 = vld [vmem:[#allocation10 + $0x70] sm:$0xff] }
  0x88   :  { %990 = vmatpush1.bf16.msra.mxu0 %v989_v23  ;;  %1015 = vmatprep.subr.bf16.mxu1 %v1375_v21  ;;  %v155_v40 = vld [vmem:[#allocation10 + $0xc8] sm:$0xff]  ;;  %v997_v43 = vpack.c.bf16 %v151_v39, %v148_v38  ;;  %v154_v47 = vld [vmem:[#allocation10 + $0xc0] sm:$0xff]  ;;  %v157_v48 = vld [vmem:[#allocation10 + $0xd8] sm:$0xff] }
  0x89   :  { %992 = vmatprep.subr.bf16.mxu0 %v991_v27  ;;  %v147_v45 = vld [vmem:[#allocation10 + $0x88] sm:$0xff]  ;;  %v999_v46 = vpack.c.bf16 %v158_v41, %v155_v40  ;;  %v161_v49 = vld [vmem:[#allocation10 + $0xf8] sm:$0xff]  ;;  %v164_v50 = vld [vmem:[#allocation10 + $0x110] sm:$0xff]  ;;  %v1001_v52 = vpack.c.bf16 %v157_v48, %v154_v47 }
  0x8a   :  { %869 = vmatmul.mubr.msk.f32.vlgmr.msra.gmra.mrb[2].mxu1 %vm184_vm0, %v129_v12  ;;  %v1022_v51 = vpack.c.bf16 %v147_v45, %v144_v44  ;;  %v150_v53 = vld [vmem:[#allocation10 + $0xa0] sm:$0xff]  ;;  %v153_v54 = vld [vmem:[#allocation10 + $0xb8] sm:$0xff]  ;;  %v1003_v55 = vpack.c.bf16 %v164_v50, %v161_v49  ;;  %v160_v56 = vld [vmem:[#allocation10 + $0xf0] sm:$0xff] }
  0x8b   :  { %1017 = vmatpush3.bf16.msra.mxu1 %v1016_v33  ;;  %903 = vmatprep.mubr.msk.f32.mxu1 %vm1376_vm1, %v1374_v0  ;;  %v163_v57 = vld [vmem:[#allocation10 + $0x108] sm:$0xff]  ;;  %v170_v59 = vld [vmem:[#allocation10 + $0x140] sm:$0xff]  ;;  %v1025_v60 = vpack.c.bf16 %v153_v54, %v150_v53  ;;  %v156_v62 = vld [vmem:[#allocation10 + $0xd0] sm:$0xff] }
  0x8c   :  { %994 = vmatpush1.bf16.msra.mxu0 %v993_v34  ;;  %1018 = vmatprep.subr.bf16.mxu1 %v1375_v21  ;;  %v167_v58 = vld [vmem:[#allocation10 + $0x128] sm:$0xff]  ;;  %v1005_v61 = vpack.c.bf16 %v163_v57, %v160_v56  ;;  %v166_v2 = vld [vmem:[#allocation10 + $0x120] sm:$0xff]  ;;  %v169_v3 = vld [vmem:[#allocation10 + $0x138] sm:$0xff] }
  0x8d   :  { %996 = vmatprep.subr.bf16.mxu0 %v995_v37  ;;  %v159_v63 = vld [vmem:[#allocation10 + $0xe8] sm:$0xff]  ;;  %v1007_v1 = vpack.c.bf16 %v170_v59, %v167_v58  ;;  %v173_v4 = vld [vmem:[#allocation10 + $0x158] sm:$0xff]  ;;  %v176_v5 = vld [vmem:[#allocation10 + $0x170] sm:$0xff]  ;;  %v1009_v7 = vpack.c.bf16 %v169_v3, %v166_v2 }
  0x8e   :  { %v1028_v6 = vpack.c.bf16 %v159_v63, %v156_v62  ;;  %v162_v8 = vld [vmem:[#allocation10 + $0x100] sm:$0xff]  ;;  %v165_v9 = vld [vmem:[#allocation10 + $0x118] sm:$0xff]  ;;  %v1011_v10 = vpack.c.bf16 %v176_v5, %v173_v4  ;;  %v172_v11 = vld [vmem:[#allocation10 + $0x150] sm:$0xff] }
  0x8f   :  { %1020 = vmatpush3.bf16.msra.mxu1 %v1019_v42  ;;  %v175_v12 = vld [vmem:[#allocation10 + $0x168] sm:$0xff]  ;;  %v471_v13 = vld [vmem:[#allocation13 + $0x8] sm:$0xff]  ;;  %v474_v14 = vld [vmem:[#allocation13 + $0x20] sm:$0xff]  ;;  %v1031_v15 = vpack.c.bf16 %v165_v9, %v162_v8 }
  0x90   :  { %998 = vmatpush1.bf16.msra.mxu0 %v997_v43  ;;  %1021 = vmatprep.subr.bf16.mxu1 %v1375_v21  ;;  %v1013_v16 = vpack.c.bf16 %v175_v12, %v172_v11  ;;  %v168_v17 = vld [vmem:[#allocation10 + $0x130] sm:$0xff]  ;;  %v171_v18 = vld [vmem:[#allocation10 + $0x148] sm:$0xff]  ;;  %v1039_v19 = vpack.c.bf16 %v474_v14, %v471_v13  ;;  %v480_v24 = vld [vmem:[#allocation13 + $0x50] sm:$0xff] }
  0x91   :  { %1000 = vmatprep.subr.bf16.mxu0 %v999_v46  ;;  %v470_v20 = vld [vmem:[#allocation13] sm:$0xff]  ;;  %v473_v22 = vld [vmem:[#allocation13 + $0x18] sm:$0xff]  ;;  %v1034_v25 = vpack.c.bf16 %v171_v18, %v168_v17  ;;  %v174_v28 = vld [vmem:[#allocation10 + $0x160] sm:$0xff] }
  0x92   :  { %v477_v23 = vld [vmem:[#allocation13 + $0x38] sm:$0xff]  ;;  %v1041_v27 = vpack.c.bf16 %v473_v22, %v470_v20  ;;  %v177_v29 = vld [vmem:[#allocation10 + $0x178] sm:$0xff]  ;;  %v476_v31 = vld [vmem:[#allocation13 + $0x30] sm:$0xff] }
  0x93   :  { %1023 = vmatpush3.bf16.msra.mxu1 %v1022_v51  ;;  %v1547_v26 = vld [vmem:[#allocation4] sm:$0xff]  ;;  %v1043_v30 = vpack.c.bf16 %v480_v24, %v477_v23  ;;  %v479_v32 = vld [vmem:[#allocation13 + $0x48] sm:$0xff]  ;;  %v486_v34 = vld [vmem:[#allocation13 + $0x80] sm:$0xff]  ;;  %v1037_v35 = vpack.c.bf16 %v177_v29, %v174_v28 }
  0x94   :  { %1002 = vmatpush1.bf16.msra.mxu0 %v1001_v52  ;;  %1024 = vmatprep.subr.bf16.mxu1 %v1375_v21  ;;  %v483_v33 = vld [vmem:[#allocation13 + $0x68] sm:$0xff]  ;;  %v1045_v36 = vpack.c.bf16 %v479_v32, %v476_v31  ;;  %v472_v37 = vld [vmem:[#allocation13 + $0x10] sm:$0xff]  ;;  %v482_v40 = vld [vmem:[#allocation13 + $0x60] sm:$0xff] }
  0x95   :  { %1004 = vmatprep.subr.bf16.mxu0 %v1003_v55  ;;  %v475_v38 = vld [vmem:[#allocation13 + $0x28] sm:$0xff]  ;;  %v1047_v39 = vpack.c.bf16 %v486_v34, %v483_v33  ;;  %v485_v41 = vld [vmem:[#allocation13 + $0x78] sm:$0xff]  ;;  %v492_v43 = vld [vmem:[#allocation13 + $0xb0] sm:$0xff] }
  0x96   :  { %v489_v42 = vld [vmem:[#allocation13 + $0x98] sm:$0xff]  ;;  %v1072_v44 = vpack.c.bf16 %v475_v38, %v472_v37  ;;  %v1049_v45 = vpack.c.bf16 %v485_v41, %v482_v40  ;;  %v478_v46 = vld [vmem:[#allocation13 + $0x40] sm:$0xff]  ;;  %v488_v49 = vld [vmem:[#allocation13 + $0x90] sm:$0xff] }
  0x97   :  { %1026 = vmatpush3.bf16.msra.mxu1 %v1025_v60  ;;  %v481_v47 = vld [vmem:[#allocation13 + $0x58] sm:$0xff]  ;;  %v1051_v48 = vpack.c.bf16 %v492_v43, %v489_v42  ;;  %v491_v50 = vld [vmem:[#allocation13 + $0xa8] sm:$0xff]  ;;  %v498_v52 = vld [vmem:[#allocation13 + $0xe0] sm:$0xff] }
  0x98   :  { %1006 = vmatpush1.bf16.msra.mxu0 %v1005_v61  ;;  %1027 = vmatprep.subr.bf16.mxu1 %v1375_v21  ;;  %v495_v51 = vld [vmem:[#allocation13 + $0xc8] sm:$0xff]  ;;  %v1075_v53 = vpack.c.bf16 %v481_v47, %v478_v46  ;;  %v1053_v54 = vpack.c.bf16 %v491_v50, %v488_v49  ;;  %v484_v55 = vld [vmem:[#allocation13 + $0x70] sm:$0xff]  ;;  %v494_v58 = vld [vmem:[#allocation13 + $0xc0] sm:$0xff] }
  0x99   :  { %1008 = vmatprep.subr.bf16.mxu0 %v1007_v1  ;;  %v487_v56 = vld [vmem:[#allocation13 + $0x88] sm:$0xff]  ;;  %v1055_v57 = vpack.c.bf16 %v498_v52, %v495_v51  ;;  %v497_v59 = vld [vmem:[#allocation13 + $0xd8] sm:$0xff]  ;;  %v504_v61 = vld [vmem:[#allocation13 + $0x110] sm:$0xff] }
  0x9a   :  { %v501_v60 = vld [vmem:[#allocation13 + $0xf8] sm:$0xff]  ;;  %v1078_v62 = vpack.c.bf16 %v487_v56, %v484_v55  ;;  %v1057_v63 = vpack.c.bf16 %v497_v59, %v494_v58  ;;  %v490_v1 = vld [vmem:[#allocation13 + $0xa0] sm:$0xff]  ;;  %v500_v4 = vld [vmem:[#allocation13 + $0xf0] sm:$0xff] }
  0x9b   :  { %1029 = vmatpush3.bf16.msra.mxu1 %v1028_v6  ;;  %v493_v2 = vld [vmem:[#allocation13 + $0xb8] sm:$0xff]  ;;  %v1059_v3 = vpack.c.bf16 %v504_v61, %v501_v60  ;;  %v503_v5 = vld [vmem:[#allocation13 + $0x108] sm:$0xff]  ;;  %v506_v13 = vld [vmem:[#allocation13 + $0x120] sm:$0xff] }
  0x9c   :  { %1010 = vmatpush1.bf16.msra.mxu0 %v1009_v7  ;;  %1030 = vmatprep.subr.bf16.mxu1 %v1375_v21  ;;  %v507_v6 = vld [vmem:[#allocation13 + $0x128] sm:$0xff]  ;;  %v510_v7 = vld [vmem:[#allocation13 + $0x140] sm:$0xff]  ;;  %v1081_v8 = vpack.c.bf16 %v493_v2, %v490_v1  ;;  %v1061_v9 = vpack.c.bf16 %v503_v5, %v500_v4  ;;  %v509_v14 = vld [vmem:[#allocation13 + $0x138] sm:$0xff] }
  0x9d   :  { %1012 = vmatprep.subr.bf16.mxu0 %v1011_v10  ;;  %v496_v10 = vld [vmem:[#allocation13 + $0xd0] sm:$0xff]  ;;  %v499_v11 = vld [vmem:[#allocation13 + $0xe8] sm:$0xff]  ;;  %v1063_v12 = vpack.c.bf16 %v510_v7, %v507_v6  ;;  %v1065_v18 = vpack.c.bf16 %v509_v14, %v506_v13  ;;  %v505_v20 = vld [vmem:[#allocation13 + $0x118] sm:$0xff] }
  0x9e   :  { %v1084_v17 = vpack.c.bf16 %v499_v11, %v496_v10  ;;  %v512_v23 = vld [vmem:[#allocation13 + $0x150] sm:$0xff]  ;;  %v515_v24 = vld [vmem:[#allocation13 + $0x168] sm:$0xff]  ;;  %v125_v31 = vld [vmem:[#allocation7] sm:$0xff] }
  0x9f   :  { %1032 = vmatpush3.bf16.msra.mxu1 %v1031_v15  ;;  %v513_v15 = vld [vmem:[#allocation13 + $0x158] sm:$0xff]  ;;  %v508_v28 = vld [vmem:[#allocation13 + $0x130] sm:$0xff]  ;;  %v511_v29 = vld [vmem:[#allocation13 + $0x148] sm:$0xff] }
  0xa0   :  { %1014 = vmatpush1.bf16.msra.mxu0 %v1013_v16  ;;  %1033 = vmatprep.subr.bf16.mxu1 %v1375_v21  ;;  %v516_v16 = vld [vmem:[#allocation13 + $0x170] sm:$0xff]  ;;  %v514_v32 = vld [vmem:[#allocation13 + $0x160] sm:$0xff]  ;;  %v517_v33 = vld [vmem:[#allocation13 + $0x178] sm:$0xff] }
  0xa1   :  { %1040 = vmatprep.subr.bf16.mxu0 %v1039_v19  ;;  %v502_v19 = vld [vmem:[#allocation13 + $0x100] sm:$0xff]  ;;  %v1067_v22 = vpack.c.bf16 %v516_v16, %v513_v15  ;;  %v1093_v34 = vpack.c.bf16 %v517_v33, %v514_v32  ;;  %v679_v38 = vld [vmem:[#allocation15 + $0x10] sm:$0xff]  ;;  %v682_v42 = vld [vmem:[#allocation15 + $0x28] sm:$0xff] }
  0xa2   :  { %v681_v41 = vld [vmem:[#allocation15 + $0x20] sm:$0xff]  ;;  %v686_v47 = vld [vmem:[#allocation15 + $0x48] sm:$0xff]  ;;  %v687_v49 = vld [vmem:[#allocation15 + $0x50] sm:$0xff] }
  0xa3   :  { %394 = vmatmul.mubr.f32.vlgmr.msra.gmra.mrb[0].mxu0 %v1547_v26  ;;  %1035 = vmatpush3.bf16.msra.mxu1 %v1034_v25  ;;  %v1087_v25 = vpack.c.bf16 %v505_v20, %v502_v19  ;;  %v1102_v43 = vpack.c.bf16 %v682_v42, %v681_v41  ;;  %v685_v46 = vld [vmem:[#allocation15 + $0x40] sm:$0xff]  ;;  %v688_v50 = vld [vmem:[#allocation15 + $0x58] sm:$0xff]  ;;  %v691_v55 = vld [vmem:[#allocation15 + $0x70] sm:$0xff] }
  0xa4   :  { %1042 = vmatpush1.bf16.msra.mxu0 %v1041_v27  ;;  %1036 = vmatprep.subr.bf16.mxu1 %v1375_v21  ;;  %v1069_v27 = vpack.c.bf16 %v515_v24, %v512_v23  ;;  %v1111_v51 = vpack.c.bf16 %v688_v50, %v687_v49  ;;  %v689_v52 = vld [vmem:[#allocation15 + $0x60] sm:$0xff]  ;;  %v692_v56 = vld [vmem:[#allocation15 + $0x78] sm:$0xff] }
  0xa5   :  { %1044 = vmatprep.subr.bf16.mxu0 %v1043_v30  ;;  %582 = vmatprep.mubr.f32.mxu0 %v1374_v0  ;;  %v1090_v30 = vpack.c.bf16 %v511_v29, %v508_v28 }
  0xa7   :  { %1038 = vmatpush3.bf16.msra.mxu1 %v1037_v35  ;;  %v677_v35 = vld [vmem:[#allocation15] sm:$0xff] }
  0xa8   :  { %1046 = vmatpush1.bf16.msra.mxu0 %v1045_v36  ;;  %1071 = vmatprep.subr.bf16.mxu1 %v1375_v21  ;;  %v678_v36 = vld [vmem:[#allocation15 + $0x8] sm:$0xff] }
  0xa9   :  { %1048 = vmatprep.subr.bf16.mxu0 %v1047_v39  ;;  %v1096_v37 = vpack.c.bf16 %v678_v36, %v677_v35  ;;  %v680_v39 = vld [vmem:[#allocation15 + $0x18] sm:$0xff] }
  0xaa   :  { %904 = vmatmul.mubr.f32.vlgmr.msra.gmra.mrb[2].mxu1 %v1547_v26  ;;  %v1099_v40 = vpack.c.bf16 %v680_v39, %v679_v38 }
  0xab   :  { %1073 = vmatpush3.bf16.msra.mxu1 %v1072_v44  ;;  %938 = vmatprep.mubr.msk.f32.mxu1 %vm1376_vm1, %v1374_v0  ;;  %v684_v44 = vld [vmem:[#allocation15 + $0x38] sm:$0xff] }
  0xac   :  { %1050 = vmatpush1.bf16.msra.mxu0 %v1049_v45  ;;  %1074 = vmatprep.subr.bf16.mxu1 %v1375_v21 }
  0xad   :  { %1052 = vmatprep.subr.bf16.mxu0 %v1051_v48  ;;  %v1108_v48 = vpack.c.bf16 %v686_v47, %v685_v46 }
  0xaf   :  { %1076 = vmatpush3.bf16.msra.mxu1 %v1075_v53  ;;  %v690_v53 = vld [vmem:[#allocation15 + $0x68] sm:$0xff] }
  0xb0   :  { %1054 = vmatpush1.bf16.msra.mxu0 %v1053_v54  ;;  %1077 = vmatprep.subr.bf16.mxu1 %v1375_v21  ;;  %v1114_v54 = vpack.c.bf16 %v690_v53, %v689_v52 }
  0xb1   :  { %1056 = vmatprep.subr.bf16.mxu0 %v1055_v57  ;;  %v1117_v57 = vpack.c.bf16 %v692_v56, %v691_v55 }
  0xb3   :  { %1079 = vmatpush3.bf16.msra.mxu1 %v1078_v62 }
  0xb4   :  { %1058 = vmatpush1.bf16.msra.mxu0 %v1057_v63  ;;  %1080 = vmatprep.subr.bf16.mxu1 %v1375_v21 }
  0xb5   :  { %1060 = vmatprep.subr.bf16.mxu0 %v1059_v3 }
  0xb7   :  { %1082 = vmatpush3.bf16.msra.mxu1 %v1081_v8 }
  0xb8   :  { %1062 = vmatpush1.bf16.msra.mxu0 %v1061_v9  ;;  %1083 = vmatprep.subr.bf16.mxu1 %v1375_v21 }
  0xb9   :  { %1064 = vmatprep.subr.bf16.mxu0 %v1063_v12 }
  0xbb   :  { %1085 = vmatpush3.bf16.msra.mxu1 %v1084_v17 }
  0xbc   :  { %1066 = vmatpush1.bf16.msra.mxu0 %v1065_v18  ;;  %1086 = vmatprep.subr.bf16.mxu1 %v1375_v21 }
  0xbd   :  { %1068 = vmatprep.subr.bf16.mxu0 %v1067_v22 }
  0xbf   :  { %1088 = vmatpush3.bf16.msra.mxu1 %v1087_v25 }
  0xc0   :  { %1070 = vmatpush1.bf16.msra.mxu0 %v1069_v27  ;;  %1089 = vmatprep.subr.bf16.mxu1 %v1375_v21 }
  0xc1   :  { %1095 = vmatprep.subr.bf16.mxu0 %v1375_v21 }
  0xc3   :  { %583 = vmatmul.mubr.f32.vlgmr.msra.gmra.mrb[0].mxu0 %v125_v31  ;;  %1091 = vmatpush3.bf16.msra.mxu1 %v1090_v30 }
  0xc4   :  { %1092 = vmatprep.subr.bf16.mxu1 %v1375_v21  ;;  %973 = vmatprep.mubr.msk.f32.mxu0 %vm1376_vm1, %v1374_v0  ;;  %v683_v0 = vld [vmem:[#allocation15 + $0x30] sm:$0xff] }
  0xc5   :  { %1097 = vmatpush3.bf16.msra.mxu0 %v1096_v37  ;;  %v1105_v45 = vpack.c.bf16 %v684_v44, %v683_v0 }
  0xc6   :  { %1098 = vmatprep.subr.bf16.mxu0 %v1375_v21 }
  0xc7   :  { %1094 = vmatpush3.bf16.msra.mxu1 %v1093_v34 }
  0xc9   :  { %1100 = vmatpush3.bf16.msra.mxu0 %v1099_v40 }
  0xca   :  { %939 = vmatmul.mubr.f32.vlgmr.msra.gmra.mrb[2].mxu1 %v125_v31  ;;  %1101 = vmatprep.subr.bf16.mxu0 %v1375_v21 }
  0xcd   :  { %1103 = vmatpush3.bf16.msra.mxu0 %v1102_v43 }
  0xce   :  { %1104 = vmatprep.subr.bf16.mxu0 %v1375_v21 }
  0xd1   :  { %1106 = vmatpush3.bf16.msra.mxu0 %v1105_v45 }
  0xd2   :  { %1107 = vmatprep.subr.bf16.mxu0 %v1375_v21 }
  0xd5   :  { %1109 = vmatpush3.bf16.msra.mxu0 %v1108_v48 }
  0xd6   :  { %1110 = vmatprep.subr.bf16.mxu0 %v1375_v21 }
  0xd9   :  { %1112 = vmatpush3.bf16.msra.mxu0 %v1111_v51 }
  0xda   :  { %1113 = vmatprep.subr.bf16.mxu0 %v1375_v21 }
  0xdd   :  { %1115 = vmatpush3.bf16.msra.mxu0 %v1114_v54 }
  0xde   :  { %1116 = vmatprep.subr.bf16.mxu0 %v1375_v21 }
  0xe1   :  { %1118 = vmatpush3.bf16.msra.mxu0 %v1117_v57 }
 0x159   :  { %v254_v58 = vpop.f32.mrb[0].mxu1 }
 0x15a   :  { %v256_v59 = vpop.f32.mrb[1].mxu1 }
 0x196   :  { %v584_v60 = vpop.f32.mrb[0].mxu0 }
 0x197   :  { %v1119_v61 = vadd.f32 %v584_v60, %v254_v58  ;;  %v586_v62 = vpop.f32.mrb[1].mxu0 }
 0x198   :  { %v1120_v63 = vadd.f32 %v586_v62, %v256_v59 }
 0x199   :  { %v662_v1 = vmul.f32 0.5, %v1119_v61 }
 0x19a   :  { %v663_v2 = vmul.f32 0.5, %v1120_v63 }
 0x19b   :  { %1143 = vtanh.f32 %v662_v1 }
 0x19c   :  { %1145 = vtanh.f32 %v663_v2 }
 0x19d   :  { %v655_v3 = vpop.f32.mrb[2].mxu1 }
 0x19e   :  { %v664_v4 = vmul.f32 0.5, %v655_v3  ;;  %v940_v5 = vpop.f32.mrb[3].mxu1 }
 0x1a0   :  { %1147 = vtanh.f32 %v664_v4 }
 0x1a5   :  { %v1144_v6 = vpop.eup %1143 }
 0x1a6   :  { %v1146_v21 = vpop.eup %1145  ;;  %v668_v7 = vadd.f32 1.0, %v1144_v6 }
 0x1a7   :  { %v669_v8 = vadd.f32 1.0, %v1146_v21 }
 0x1a8   :  { %v671_v10 = vmul.f32 0.5, %v668_v7 }
 0x1a9   :  { %v672_v12 = vmul.f32 0.5, %v669_v8 }
 0x1aa   :  { %v1148_v9 = vpop.eup %1147  ;;  %v674_v14 = vmul.f32 %v671_v10, %v1547_v26 }
 0x1ab   :  { %v670_v11 = vadd.f32 1.0, %v1148_v9 }
 0x1ad   :  { %v673_v13 = vmul.f32 0.5, %v670_v11 }
 0x1af   :  { %v675_v15 = vmul.f32 %v673_v13, %v672_v12 }
 0x1b1   :  { %v676_v16 = vadd.f32 %v675_v15, %v674_v14 }
 0x1b3   :  { %974 = vmatmul.mubr.f32.vlgmr.msra.gmra.mrb[2].mxu0 %v676_v16  ;;  %775 = vst [vmem:[#allocation17] sm:$0xff] %v676_v16 }
 0x1b4   :  { %1318 = shalt.err (!%p1315_p4)
}
 0x1b5   :  { %s1319_s21 = scalar_lea.hbm %s1606_s8, 128 }
 0x1b6   :  { %p1320_p5 = scmp.ne.s32.totalorder %s1606_s8, %s1319_s21  ;;  %p1323_p6 = scmp.lt.u32.totalorder %s1319_s21, %s1606_s8 }
 0x1b8   :  { %p1325_p7 = pnand %p1323_p6, %p1320_p5 }
 0x1ba   :  { %1328 = shalt.err (!%p1325_p7)
}
 0x1bb   :  { %795 = dma.vmem_to_hbm [thread:$0]  %s793_s30, 128, %s1606_s8, [#allocation18]  }
 0x1bc   :  { %s1378_s29 = smov [#allocation16]  }
 0x1bd   :  { %s782_s2 = sshll.u32 %s1378_s29, 4  ;;  %s783_s2 = int_to_ptr.vmem [resolvable:$true] %s782_s2 }
 0x1be   :  { %s1329_s5 = scalar_lea.vmem %s783_s2, 128  ;;  %p1334_p9 = scmp.lt.s32.totalorder %s783_s2, %s783_s2 }
 0x1bf   :  { %p1330_p8 = scmp.ne.s32.totalorder %s783_s2, %s1329_s5  ;;  %p1335_p10 = scmp.lt.s32.totalorder %s1329_s5, %s1329_s5 }
 0x1c1   :  { %p1336_p11 = por %p1335_p10, %p1334_p9 }
 0x1c3   :  { %p1337_p12 = pnand %p1336_p11, %p1330_p8 }
 0x286   :  { %v759_v26 = vpop.f32.mrb[2].mxu0 }
 0x287   :  { %v763_v17 = vmul.f32 0.5, %v759_v26  ;;  %v975_v18 = vpop.f32.mrb[3].mxu0 }
 0x289   :  { %1149 = vtanh.f32 %v763_v17 }
 0x28a   :  { %1151 = vtanh.f32 %v676_v16 }
 0x293   :  { %v1150_v19 = vpop.eup %1149 }
 0x294   :  { %v765_v20 = vadd.f32 1.0, %v1150_v19  ;;  %v1152_v23 = vpop.eup %1151 }
 0x296   :  { %v766_v22 = vmul.f32 0.5, %v765_v20 }
 0x298   :  { %v768_v24 = vmul.f32 %v1152_v23, %v766_v22 }
 0x29a   :  { %771 = vst [vmem:[#allocation16] sm:$0xff] %v768_v24 }
 0x29b   :  { %1340 = shalt.err (!%p1337_p12)
}
 0x29c   :  { %s1341_s10 = scalar_lea.hbm %s1605_s7, 128 }
 0x29d   :  { %p1342_p13 = scmp.ne.s32.totalorder %s1605_s7, %s1341_s10  ;;  %p1345_p0 = scmp.lt.u32.totalorder %s1341_s10, %s1605_s7 }
 0x29f   :  { %p1347_p1 = pnand %p1345_p0, %p1342_p13 }
 0x2a1   :  { %1350 = shalt.err (!%p1347_p1)
}
 0x2a2   :  { %785 = dma.vmem_to_hbm [thread:$0]  %s783_s2, 128, %s1605_s7, [#allocation6]  }
 0x2a3   :  { %1359 = dma.done.wait [#allocation6], 128  }
 0x2a4   :  { %1360 = vsyncadd [#allocation6], 4294967168 }
 0x2a5   :  { %1361 = dma.done.wait [#allocation18], 128  }
 0x2a6   :  { %1362 = vsyncadd [#allocation18], 4294967168 }
 0x2a7   :  { %802 = vsyncpa [#allocation5], 1 }
 0x2a8   :  { %803 = vsyncpa [#allocation8], 1 }
 0x2a9   :  { %804 = vsyncpa [#allocation11], 1 }
 0x2aa   :  { %805 = vsyncpa [#allocation14], 1 }
 0x2ab   :  { %806 = vsyncpa [#allocation6], 1 }
 0x2ac   :  { %807 = vsyncpa [#allocation18], 1 }

</bundles_post_ra>
